<compile_context>
chip_gen: v7x
topology: tpu7x:2x2x1
jax: 0.10.0
libtpu: 0.0.40
codegen_flags: <defaults>
</compile_context>

<pallas_src>
import math
from functools import partial

import jax
import jax.numpy as jnp
from jax import lax
from jax.experimental import pallas as pl
from jax.experimental.pallas import tpu as pltpu


def _mha_kernel(
    x_ref,      # (S, D_in)            input block for this batch element
    wqkv_ref,   # (HG, D_in, 3*G*hd)   per-group fused qkv weights (resident)
    bqkv_ref,   # (HG, 1, 3*G*hd)      per-group fused qkv bias    (resident)
    wo_ref,     # (HG, G*hd, E)        per-group rows of o-proj    (resident)
    bo_ref,     # (1, E)
    o_ref,      # (S, E)               output block for this batch element
    acc_ref,    # (S, E) f32 VMEM      accumulator across head groups
    *,
    heads_per_group,
    head_dim,
):
    g_idx = pl.program_id(1)
    num_groups = pl.num_programs(1)
    G, hd = heads_per_group, head_dim
    gw = G * hd                                   # group width along E

    x = x_ref[...]                                # (S, D_in)
    in_dt = x.dtype

    # ---- fused q/k/v projection for this head group (f32 accumulation) ----
    qkv = jnp.dot(x, wqkv_ref[g_idx], preferred_element_type=jnp.float32)
    qkv = qkv + bqkv_ref[g_idx].astype(jnp.float32)            # (S, 3*gw)
    qkv = qkv.astype(in_dt)                                     # MXU operand dtype
    q = qkv[:, 0 * gw:1 * gw]      # 1/sqrt(hd) already folded into wq / bq
    k = qkv[:, 1 * gw:2 * gw]
    v = qkv[:, 2 * gw:3 * gw]

    # ---- per-sub-head attention with deferred softmax normalization -------
    head_cols = []
    for g in range(G):
        qg = q[:, g * hd:(g + 1) * hd]
        kg = k[:, g * hd:(g + 1) * hd]
        vg = v[:, g * hd:(g + 1) * hd]
        logits = lax.dot_general(                               # (S, S), no k.T
            qg, kg, (((1,), (1,)), ((), ())),
            preferred_element_type=jnp.float32,
        )
        m = jnp.max(logits, axis=-1, keepdims=True)
        e = jnp.exp(logits - m)
        denom = jnp.sum(e, axis=-1, keepdims=True)
        head_out = jnp.dot(                                     # (S, hd), unnormalized
            e.astype(in_dt), vg, preferred_element_type=jnp.float32
        )
        head_out = head_out * (1.0 / denom)                     # exact, (S, hd) only
        head_cols.append(head_out.astype(in_dt))

    group_vals = jnp.concatenate(head_cols, axis=-1)            # (S, gw)

    # ---- o-proj accumulate with contracting dim K = G*hd ------------------
    @pl.when(g_idx == 0)
    def _():
        acc_ref[...] = jnp.broadcast_to(
            bo_ref[...].astype(jnp.float32), acc_ref.shape
        )

    acc_ref[...] += jnp.dot(
        group_vals, wo_ref[g_idx], preferred_element_type=jnp.float32
    )

    @pl.when(g_idx == num_groups - 1)
    def _():
        o_ref[...] = acc_ref[...].astype(o_ref.dtype)


def _heads_per_group(num_heads, head_dim, target_width=256):
    """Smallest divisor G of num_heads with G*head_dim >= target MXU width."""
    for g in range(1, num_heads + 1):
        if num_heads % g == 0 and g * head_dim >= target_width:
            return g
    return num_heads


def prepare_mha_params(wqkv, bqkv, wo, bo, *, num_heads, heads_per_group):
    """One-time relayout of (x @ W)-oriented parameters into per-group blocks.

    Column order inside a group block: [q heads | k heads | v heads], each hd
    wide.  1/sqrt(head_dim) is folded into the q columns here so the kernel
    does no per-step scaling.
    """
    D_in, three_e = wqkv.shape
    E = three_e // 3
    H, G = num_heads, heads_per_group
    hd = E // H
    HG = H // G
    gw = G * hd

    w = wqkv.reshape(D_in, HG, G, 3, hd)
    w = jnp.transpose(w, (1, 0, 3, 2, 4)).reshape(HG, D_in, 3 * gw)
    b = bqkv.reshape(HG, G, 3, hd)
    b = jnp.transpose(b, (0, 2, 1, 3)).reshape(HG, 1, 3 * gw)

    scale = jnp.concatenate(
        [jnp.full((gw,), 1.0 / math.sqrt(hd), jnp.float32),
         jnp.ones((2 * gw,), jnp.float32)]
    )
    wqkv_g = (w * scale).astype(wqkv.dtype)
    bqkv_g = (b * scale).astype(bqkv.dtype)
    wo_g = wo.reshape(HG, gw, E)                   # group rows of the o-projection
    bo2 = bo.reshape(1, E)
    return wqkv_g, bqkv_g, wo_g, bo2


def multihead_attention_pallas(x, wqkv, bqkv, wo, bo, *, num_heads):
    """x: (B, S, D_in); wqkv: (D_in, 3E); bqkv: (3E,); wo: (E, E); bo: (E,)."""
    B, S, D_in = x.shape
    E = wo.shape[1]
    H = num_heads
    hd = E // H
    G = _heads_per_group(H, hd)
    HG = H // G
    gw = G * hd

    wqkv_g, bqkv_g, wo_g, bo2 = prepare_mha_params(
        wqkv, bqkv, wo, bo, num_heads=H, heads_per_group=G
    )

    # ---- size the scoped-VMEM limit from the actual blocks ----------------
    isz = x.dtype.itemsize
    weight_bytes = (
        (wqkv_g.size + bqkv_g.size) * wqkv_g.dtype.itemsize
        + (wo_g.size + bo2.size) * wo_g.dtype.itemsize
    )
    act_bytes = 2 * (S * D_in + S * E) * isz            # double-buffered x / out blocks
    scratch_bytes = S * E * 4                           # f32 accumulator
    temp_bytes = 2 * S * S * 4 * min(G, 2) + S * 3 * gw * 4
    est = weight_bytes + act_bytes + scratch_bytes + temp_bytes
    try:
        phys_vmem = pltpu.get_tpu_info().vmem_capacity_bytes
    except Exception:
        phys_vmem = 64 * 1024 * 1024
    vmem_limit = int(
        min(phys_vmem - 4 * 1024 * 1024, max(32 * 1024 * 1024, 2 * est))
    )

    const3 = lambda bi, gi: (0, 0, 0)

    return pl.pallas_call(
        partial(_mha_kernel, heads_per_group=G, head_dim=hd),
        out_shape=jax.ShapeDtypeStruct((B, S, E), x.dtype),
        grid=(B, HG),
        in_specs=[
            pl.BlockSpec((None, S, D_in), lambda bi, gi: (bi, 0, 0)),   # x
            pl.BlockSpec((HG, D_in, 3 * gw), const3),                   # fused qkv weights
            pl.BlockSpec((HG, 1, 3 * gw), const3),                      # fused qkv bias
            pl.BlockSpec((HG, gw, E), const3),                          # o-proj row blocks
            pl.BlockSpec((1, E), lambda bi, gi: (0, 0)),                # o-proj bias
        ],
        out_specs=pl.BlockSpec((None, S, E), lambda bi, gi: (bi, 0, 0)),
        scratch_shapes=[pltpu.VMEM((S, E), jnp.float32)],
        compiler_params=pltpu.CompilerParams(
            dimension_semantics=("parallel", "arbitrary"),
            vmem_limit_bytes=vmem_limit,
        ),
    )(x, wqkv_g, bqkv_g, wo_g, bo2)


def _reference(x, wqkv, bqkv, wo, bo, *, num_heads):
    """Pure-JAX mirror of the PyTorch MultiheadAttention forward (mask=None)."""
    B, S, _ = x.shape
    E = wo.shape[1]
    hd = E // num_heads

    qkv = x @ wqkv + bqkv                                      # (B, S, 3E)
    qkv = qkv.reshape(B, S, num_heads, 3 * hd).transpose(0, 2, 1, 3)
    q, k, v = qkv[..., :hd], qkv[..., hd:2 * hd], qkv[..., 2 * hd:]
    logits = jnp.einsum("bhqd,bhkd->bhqk", q, k) / math.sqrt(hd)
    attn = jax.nn.softmax(logits, axis=-1)
    vals = jnp.einsum("bhqk,bhkd->bhqd", attn, v)
    vals = vals.transpose(0, 2, 1, 3).reshape(B, S, E)
    return vals @ wo + bo


def _xavier_uniform(key, shape):
    fan_in, fan_out = shape
    bound = math.sqrt(6.0 / (fan_in + fan_out))
    return jax.random.uniform(key, shape, jnp.float32, -bound, bound)


if __name__ == "__main__":
    B, S = 2, 8
    input_dim = embed_dim = 32
    num_heads = 4

    key = jax.random.PRNGKey(0)
    k0, k1, k2, k3, k4 = jax.random.split(key, 5)

    wqkv = _xavier_uniform(k0, (input_dim, 3 * embed_dim))
    bqkv = 0.01 * jax.random.normal(k1, (3 * embed_dim,), jnp.float32)
    wo = _xavier_uniform(k2, (embed_dim, embed_dim))
    bo = 0.01 * jax.random.normal(k3, (embed_dim,), jnp.float32)
    x = jax.random.normal(k4, (B, S, input_dim), jnp.float32)

    out = multihead_attention_pallas(x, wqkv, bqkv, wo, bo, num_heads=num_heads)
    out = jax.block_until_ready(out)

    ref = _reference(x, wqkv, bqkv, wo, bo, num_heads=num_heads)
    assert out.shape == (B, S, embed_dim)
    assert jnp.allclose(out, ref, atol=1e-4, rtol=1e-4), "mismatch vs reference"

    print("KERNEL_OK")
</pallas_src>

<mosaic_0001>
module attributes {stable_mosaic.version = 11 : i64} {
  func.func @_mha_kernel(%arg0: i32, %arg1: i32, %arg2: memref<1x8x32xf32, #tpu.memory_space<vmem>>, %arg3: memref<1x32x96xf32, #tpu.memory_space<vmem>>, %arg4: memref<1x1x96xf32, #tpu.memory_space<vmem>>, %arg5: memref<1x32x32xf32, #tpu.memory_space<vmem>>, %arg6: memref<1x32xf32, #tpu.memory_space<vmem>>, %arg7: memref<1x8x32xf32, #tpu.memory_space<vmem>>, %arg8: memref<8x32xf32, #tpu.memory_space<vmem>>) attributes {dimension_semantics = [#tpu.dimension_semantics<parallel>, #tpu.dimension_semantics<arbitrary>], iteration_bounds = array<i64: 2, 1>, scalar_prefetch = 0 : i64, scratch_operands = 1 : i64, tpu.core_type = #tpu.core_type<tc>, window_params = [{transform_indices = @transform_0, window_bounds = array<i64: 1, 8, 32>}, {pipeline_mode = #tpu.pipeline_mode<synchronous>, transform_indices = @transform_1, window_bounds = array<i64: 1, 32, 96>}, {pipeline_mode = #tpu.pipeline_mode<synchronous>, transform_indices = @transform_2, window_bounds = array<i64: 1, 1, 96>}, {pipeline_mode = #tpu.pipeline_mode<synchronous>, transform_indices = @transform_3, window_bounds = array<i64: 1, 32, 32>}, {pipeline_mode = #tpu.pipeline_mode<synchronous>, transform_indices = @transform_4, window_bounds = array<i64: 1, 32>}, {transform_indices = @transform_5, window_bounds = array<i64: 1, 8, 32>}]} {
    %c0 = arith.constant 0 : index
    %c0_0 = arith.constant 0 : index
    %c0_1 = arith.constant 0 : index
    %0 = vector.load %arg2[%c0, %c0_0, %c0_1] : memref<1x8x32xf32, #tpu.memory_space<vmem>>, vector<1x8x32xf32>
    %1 = vector.shape_cast %0 : vector<1x8x32xf32> to vector<8x32xf32>
    %2 = arith.index_cast %arg1 : i32 to index
    %c0_2 = arith.constant 0 : index
    %c0_3 = arith.constant 0 : index
    %3 = vector.load %arg3[%2, %c0_2, %c0_3] : memref<1x32x96xf32, #tpu.memory_space<vmem>>, vector<1x32x96xf32>
    %4 = vector.shape_cast %3 : vector<1x32x96xf32> to vector<32x96xf32>
    %cst = arith.constant dense<0.000000e+00> : vector<8x96xf32>
    %5 = tpu.matmul %1, %4, %cst {dimension_numbers = #tpu.dot_dimension_numbers<[1], [0], [0], [1], [0, 0, 1, 1], [], []>} : vector<8x32xf32>, vector<32x96xf32>, vector<8x96xf32> -> vector<8x96xf32>
    %6 = arith.index_cast %arg1 : i32 to index
    %c0_4 = arith.constant 0 : index
    %c0_5 = arith.constant 0 : index
    %7 = vector.load %arg4[%6, %c0_4, %c0_5] : memref<1x1x96xf32, #tpu.memory_space<vmem>>, vector<1x1x96xf32>
    %8 = vector.shape_cast %7 : vector<1x1x96xf32> to vector<1x96xf32>
    %9 = vector.broadcast %8 : vector<1x96xf32> to vector<8x96xf32>
    %10 = arith.addf %5, %9 : vector<8x96xf32>
    %11 = vector.extract_strided_slice %10 {offsets = [0, 0], sizes = [8, 32], strides = [1, 1]} : vector<8x96xf32> to vector<8x32xf32>
    %12 = vector.extract_strided_slice %10 {offsets = [0, 32], sizes = [8, 32], strides = [1, 1]} : vector<8x96xf32> to vector<8x32xf32>
    %13 = vector.extract_strided_slice %10 {offsets = [0, 64], sizes = [8, 32], strides = [1, 1]} : vector<8x96xf32> to vector<8x32xf32>
    %14 = vector.extract_strided_slice %11 {offsets = [0, 0], sizes = [8, 8], strides = [1, 1]} : vector<8x32xf32> to vector<8x8xf32>
    %15 = vector.extract_strided_slice %12 {offsets = [0, 0], sizes = [8, 8], strides = [1, 1]} : vector<8x32xf32> to vector<8x8xf32>
    %16 = vector.extract_strided_slice %13 {offsets = [0, 0], sizes = [8, 8], strides = [1, 1]} : vector<8x32xf32> to vector<8x8xf32>
    %cst_6 = arith.constant dense<0.000000e+00> : vector<8x8xf32>
    %17 = tpu.matmul %14, %15, %cst_6 {dimension_numbers = #tpu.dot_dimension_numbers<[1], [1], [0], [0], [0, 0, 1, 0], [], []>} : vector<8x8xf32>, vector<8x8xf32>, vector<8x8xf32> -> vector<8x8xf32>
    %cst_7 = arith.constant dense<0xFF800000> : vector<8xf32>
    %18 = vector.multi_reduction <maximumf>, %17, %cst_7 [1] : vector<8x8xf32> to vector<8xf32>
    %19 = vector.shape_cast %18 : vector<8xf32> to vector<8x1xf32>
    %20 = vector.broadcast %19 : vector<8x1xf32> to vector<8x8xf32>
    %21 = arith.subf %17, %20 : vector<8x8xf32>
    %22 = math.exp %21 : vector<8x8xf32>
    %cst_8 = arith.constant dense<0.000000e+00> : vector<8xf32>
    %23 = vector.multi_reduction <add>, %22, %cst_8 [1] : vector<8x8xf32> to vector<8xf32>
    %24 = vector.shape_cast %23 : vector<8xf32> to vector<8x1xf32>
    %cst_9 = arith.constant dense<0.000000e+00> : vector<8x8xf32>
    %25 = tpu.matmul %22, %16, %cst_9 {dimension_numbers = #tpu.dot_dimension_numbers<[1], [0], [0], [1], [0, 0, 1, 1], [], []>} : vector<8x8xf32>, vector<8x8xf32>, vector<8x8xf32> -> vector<8x8xf32>
    %cst_10 = arith.constant 1.000000e+00 : f32
    %26 = vector.broadcast %cst_10 : f32 to vector<8x1xf32>
    %27 = arith.divf %26, %24 : vector<8x1xf32>
    %28 = vector.broadcast %27 : vector<8x1xf32> to vector<8x8xf32>
    %29 = arith.mulf %25, %28 : vector<8x8xf32>
    %30 = vector.extract_strided_slice %11 {offsets = [0, 8], sizes = [8, 8], strides = [1, 1]} : vector<8x32xf32> to vector<8x8xf32>
    %31 = vector.extract_strided_slice %12 {offsets = [0, 8], sizes = [8, 8], strides = [1, 1]} : vector<8x32xf32> to vector<8x8xf32>
    %32 = vector.extract_strided_slice %13 {offsets = [0, 8], sizes = [8, 8], strides = [1, 1]} : vector<8x32xf32> to vector<8x8xf32>
    %cst_11 = arith.constant dense<0.000000e+00> : vector<8x8xf32>
    %33 = tpu.matmul %30, %31, %cst_11 {dimension_numbers = #tpu.dot_dimension_numbers<[1], [1], [0], [0], [0, 0, 1, 0], [], []>} : vector<8x8xf32>, vector<8x8xf32>, vector<8x8xf32> -> vector<8x8xf32>
    %cst_12 = arith.constant dense<0xFF800000> : vector<8xf32>
    %34 = vector.multi_reduction <maximumf>, %33, %cst_12 [1] : vector<8x8xf32> to vector<8xf32>
    %35 = vector.shape_cast %34 : vector<8xf32> to vector<8x1xf32>
    %36 = vector.broadcast %35 : vector<8x1xf32> to vector<8x8xf32>
    %37 = arith.subf %33, %36 : vector<8x8xf32>
    %38 = math.exp %37 : vector<8x8xf32>
    %cst_13 = arith.constant dense<0.000000e+00> : vector<8xf32>
    %39 = vector.multi_reduction <add>, %38, %cst_13 [1] : vector<8x8xf32> to vector<8xf32>
    %40 = vector.shape_cast %39 : vector<8xf32> to vector<8x1xf32>
    %cst_14 = arith.constant dense<0.000000e+00> : vector<8x8xf32>
    %41 = tpu.matmul %38, %32, %cst_14 {dimension_numbers = #tpu.dot_dimension_numbers<[1], [0], [0], [1], [0, 0, 1, 1], [], []>} : vector<8x8xf32>, vector<8x8xf32>, vector<8x8xf32> -> vector<8x8xf32>
    %cst_15 = arith.constant 1.000000e+00 : f32
    %42 = vector.broadcast %cst_15 : f32 to vector<8x1xf32>
    %43 = arith.divf %42, %40 : vector<8x1xf32>
    %44 = vector.broadcast %43 : vector<8x1xf32> to vector<8x8xf32>
    %45 = arith.mulf %41, %44 : vector<8x8xf32>
    %46 = vector.extract_strided_slice %11 {offsets = [0, 16], sizes = [8, 8], strides = [1, 1]} : vector<8x32xf32> to vector<8x8xf32>
    %47 = vector.extract_strided_slice %12 {offsets = [0, 16], sizes = [8, 8], strides = [1, 1]} : vector<8x32xf32> to vector<8x8xf32>
    %48 = vector.extract_strided_slice %13 {offsets = [0, 16], sizes = [8, 8], strides = [1, 1]} : vector<8x32xf32> to vector<8x8xf32>
    %cst_16 = arith.constant dense<0.000000e+00> : vector<8x8xf32>
    %49 = tpu.matmul %46, %47, %cst_16 {dimension_numbers = #tpu.dot_dimension_numbers<[1], [1], [0], [0], [0, 0, 1, 0], [], []>} : vector<8x8xf32>, vector<8x8xf32>, vector<8x8xf32> -> vector<8x8xf32>
    %cst_17 = arith.constant dense<0xFF800000> : vector<8xf32>
    %50 = vector.multi_reduction <maximumf>, %49, %cst_17 [1] : vector<8x8xf32> to vector<8xf32>
    %51 = vector.shape_cast %50 : vector<8xf32> to vector<8x1xf32>
    %52 = vector.broadcast %51 : vector<8x1xf32> to vector<8x8xf32>
    %53 = arith.subf %49, %52 : vector<8x8xf32>
    %54 = math.exp %53 : vector<8x8xf32>
    %cst_18 = arith.constant dense<0.000000e+00> : vector<8xf32>
    %55 = vector.multi_reduction <add>, %54, %cst_18 [1] : vector<8x8xf32> to vector<8xf32>
    %56 = vector.shape_cast %55 : vector<8xf32> to vector<8x1xf32>
    %cst_19 = arith.constant dense<0.000000e+00> : vector<8x8xf32>
    %57 = tpu.matmul %54, %48, %cst_19 {dimension_numbers = #tpu.dot_dimension_numbers<[1], [0], [0], [1], [0, 0, 1, 1], [], []>} : vector<8x8xf32>, vector<8x8xf32>, vector<8x8xf32> -> vector<8x8xf32>
    %cst_20 = arith.constant 1.000000e+00 : f32
    %58 = vector.broadcast %cst_20 : f32 to vector<8x1xf32>
    %59 = arith.divf %58, %56 : vector<8x1xf32>
    %60 = vector.broadcast %59 : vector<8x1xf32> to vector<8x8xf32>
    %61 = arith.mulf %57, %60 : vector<8x8xf32>
    %62 = vector.extract_strided_slice %11 {offsets = [0, 24], sizes = [8, 8], strides = [1, 1]} : vector<8x32xf32> to vector<8x8xf32>
    %63 = vector.extract_strided_slice %12 {offsets = [0, 24], sizes = [8, 8], strides = [1, 1]} : vector<8x32xf32> to vector<8x8xf32>
    %64 = vector.extract_strided_slice %13 {offsets = [0, 24], sizes = [8, 8], strides = [1, 1]} : vector<8x32xf32> to vector<8x8xf32>
    %cst_21 = arith.constant dense<0.000000e+00> : vector<8x8xf32>
    %65 = tpu.matmul %62, %63, %cst_21 {dimension_numbers = #tpu.dot_dimension_numbers<[1], [1], [0], [0], [0, 0, 1, 0], [], []>} : vector<8x8xf32>, vector<8x8xf32>, vector<8x8xf32> -> vector<8x8xf32>
    %cst_22 = arith.constant dense<0xFF800000> : vector<8xf32>
    %66 = vector.multi_reduction <maximumf>, %65, %cst_22 [1] : vector<8x8xf32> to vector<8xf32>
    %67 = vector.shape_cast %66 : vector<8xf32> to vector<8x1xf32>
    %68 = vector.broadcast %67 : vector<8x1xf32> to vector<8x8xf32>
    %69 = arith.subf %65, %68 : vector<8x8xf32>
    %70 = math.exp %69 : vector<8x8xf32>
    %cst_23 = arith.constant dense<0.000000e+00> : vector<8xf32>
    %71 = vector.multi_reduction <add>, %70, %cst_23 [1] : vector<8x8xf32> to vector<8xf32>
    %72 = vector.shape_cast %71 : vector<8xf32> to vector<8x1xf32>
    %cst_24 = arith.constant dense<0.000000e+00> : vector<8x8xf32>
    %73 = tpu.matmul %70, %64, %cst_24 {dimension_numbers = #tpu.dot_dimension_numbers<[1], [0], [0], [1], [0, 0, 1, 1], [], []>} : vector<8x8xf32>, vector<8x8xf32>, vector<8x8xf32> -> vector<8x8xf32>
    %cst_25 = arith.constant 1.000000e+00 : f32
    %74 = vector.broadcast %cst_25 : f32 to vector<8x1xf32>
    %75 = arith.divf %74, %72 : vector<8x1xf32>
    %76 = vector.broadcast %75 : vector<8x1xf32> to vector<8x8xf32>
    %77 = arith.mulf %73, %76 : vector<8x8xf32>
    %78 = tpu.concatenate %29, %45, %61, %77 in 1 : vector<8x8xf32>, vector<8x8xf32>, vector<8x8xf32>, vector<8x8xf32> -> vector<8x32xf32>
    %c0_i32 = arith.constant 0 : i32
    %79 = arith.cmpi eq, %arg1, %c0_i32 : i32
    %80 = arith.extui %79 : i1 to i32
    %c0_i32_26 = arith.constant 0 : i32
    %81 = arith.cmpi ne, %80, %c0_i32_26 : i32
    scf.if %81 {
      %c0_36 = arith.constant 0 : index
      %c0_37 = arith.constant 0 : index
      %92 = vector.load %arg6[%c0_36, %c0_37] : memref<1x32xf32, #tpu.memory_space<vmem>>, vector<1x32xf32>
      %93 = vector.shape_cast %92 : vector<1x32xf32> to vector<1x32xf32>
      %94 = vector.broadcast %93 : vector<1x32xf32> to vector<8x32xf32>
      %c0_38 = arith.constant 0 : index
      %c0_39 = arith.constant 0 : index
      %95 = vector.load %arg8[%c0_38, %c0_39] : memref<8x32xf32, #tpu.memory_space<vmem>>, vector<8x32xf32>
      tpu.vector_store %arg8[%c0_38, %c0_39], %94 {strides = array<i32>} : memref<8x32xf32, #tpu.memory_space<vmem>>, vector<8x32xf32>,
    } else {
    }
    %c0_27 = arith.constant 0 : index
    %c0_28 = arith.constant 0 : index
    %82 = vector.load %arg8[%c0_27, %c0_28] : memref<8x32xf32, #tpu.memory_space<vmem>>, vector<8x32xf32>
    %83 = arith.index_cast %arg1 : i32 to index
    %c0_29 = arith.constant 0 : index
    %c0_30 = arith.constant 0 : index
    %84 = vector.load %arg5[%83, %c0_29, %c0_30] : memref<1x32x32xf32, #tpu.memory_space<vmem>>, vector<1x32x32xf32>
    %85 = vector.shape_cast %84 : vector<1x32x32xf32> to vector<32x32xf32>
    %cst_31 = arith.constant dense<0.000000e+00> : vector<8x32xf32>
    %86 = tpu.matmul %78, %85, %cst_31 {dimension_numbers = #tpu.dot_dimension_numbers<[1], [0], [0], [1], [0, 0, 1, 1], [], []>} : vector<8x32xf32>, vector<32x32xf32>, vector<8x32xf32> -> vector<8x32xf32>
    %87 = arith.addf %82, %86 : vector<8x32xf32>
    %c0_32 = arith.constant 0 : index
    %c0_33 = arith.constant 0 : index
    %88 = vector.load %arg8[%c0_32, %c0_33] : memref<8x32xf32, #tpu.memory_space<vmem>>, vector<8x32xf32>
    tpu.vector_store %arg8[%c0_32, %c0_33], %87 {strides = array<i32>} : memref<8x32xf32, #tpu.memory_space<vmem>>, vector<8x32xf32>,
    %c0_i32_34 = arith.constant 0 : i32
    %89 = arith.cmpi eq, %arg1, %c0_i32_34 : i32
    %90 = arith.extui %89 : i1 to i32
    %c0_i32_35 = arith.constant 0 : i32
    %91 = arith.cmpi ne, %90, %c0_i32_35 : i32
    scf.if %91 {
      %c0_36 = arith.constant 0 : index
      %c0_37 = arith.constant 0 : index
      %92 = vector.load %arg8[%c0_36, %c0_37] : memref<8x32xf32, #tpu.memory_space<vmem>>, vector<8x32xf32>
      %c0_38 = arith.constant 0 : index
      %c0_39 = arith.constant 0 : index
      %c0_40 = arith.constant 0 : index
      %93 = vector.load %arg7[%c0_38, %c0_39, %c0_40] : memref<1x8x32xf32, #tpu.memory_space<vmem>>, vector<1x8x32xf32>
      %94 = vector.shape_cast %93 : vector<1x8x32xf32> to vector<8x32xf32>
      %95 = vector.shape_cast %92 : vector<8x32xf32> to vector<1x8x32xf32>
      tpu.vector_store %arg7[%c0_38, %c0_39, %c0_40], %95 {strides = array<i32>} : memref<1x8x32xf32, #tpu.memory_space<vmem>>, vector<1x8x32xf32>,
    } else {
    }
    return
  }
  func.func @transform_0(%arg0: i32, %arg1: i32) -> (i32, i32, i32) {
    %c0_i32 = arith.constant 0 : i32
    %c0_i32_0 = arith.constant 0 : i32
    %c0_i32_1 = arith.constant 0 : i32
    return %arg0, %c0_i32, %c0_i32_0 : i32, i32, i32
  }
  func.func @transform_1(%arg0: i32, %arg1: i32) -> (i32, i32, i32) {
    %c0_i32 = arith.constant 0 : i32
    %c0_i32_0 = arith.constant 0 : i32
    %c0_i32_1 = arith.constant 0 : i32
    %c0_i32_2 = arith.constant 0 : i32
    return %c0_i32, %c0_i32_0, %c0_i32_1 : i32, i32, i32
  }
  func.func @transform_2(%arg0: i32, %arg1: i32) -> (i32, i32, i32) {
    %c0_i32 = arith.constant 0 : i32
    %c0_i32_0 = arith.constant 0 : i32
    %c0_i32_1 = arith.constant 0 : i32
    %c0_i32_2 = arith.constant 0 : i32
    return %c0_i32, %c0_i32_0, %c0_i32_1 : i32, i32, i32
  }
  func.func @transform_3(%arg0: i32, %arg1: i32) -> (i32, i32, i32) {
    %c0_i32 = arith.constant 0 : i32
    %c0_i32_0 = arith.constant 0 : i32
    %c0_i32_1 = arith.constant 0 : i32
    %c0_i32_2 = arith.constant 0 : i32
    return %c0_i32, %c0_i32_0, %c0_i32_1 : i32, i32, i32
  }
  func.func @transform_4(%arg0: i32, %arg1: i32) -> (i32, i32) {
    %c0_i32 = arith.constant 0 : i32
    %c0_i32_0 = arith.constant 0 : i32
    %c0_i32_1 = arith.constant 0 : i32
    return %c0_i32, %c0_i32_0 : i32, i32
  }
  func.func @transform_5(%arg0: i32, %arg1: i32) -> (i32, i32, i32) {
    %c0_i32 = arith.constant 0 : i32
    %c0_i32_0 = arith.constant 0 : i32
    %c0_i32_1 = arith.constant 0 : i32
    return %arg0, %c0_i32, %c0_i32_0 : i32, i32, i32
  }
}

</mosaic_0001>

<bundles_post_ra>
// kernel: tpu_custom_call.1
= control target key start
LH: loop header
LB: loop body
LE: loop exit
PB: predicated region body
PF: predicated region fallthrough
CT: control target
= control target key end

     0   :  { %10 = vsyncpa [#allocation4], 0  ;;  %s2078_s0 = inlined_call_operand.hbm [shape: f32[2,8,32], index: 0, kind: input, shape index: {}]   ;;  %s2079_s1 = inlined_call_operand.hbm [shape: f32[1,32,96], index: 1, kind: input, shape index: {}]   ;;  %s2080_s2 = inlined_call_operand.vmem [shape: f32[1,1,96], index: 2, kind: input, shape index: {}]   ;;  %s2081_s3 = inlined_call_operand.hbm [shape: f32[1,32,32], index: 3, kind: input, shape index: {}]   ;;  %s2082_s4 = inlined_call_operand.vmem [shape: f32[1,32], index: 4, kind: input, shape index: {}]   ;;  %s2083_s5 = inlined_call_operand.hbm [shape: f32[2,8,32], index: 5, kind: output, shape index: {}]  }
   0x1   :  { %12 = vsyncpa [#allocation4 + $0x1], 0 }
   0x2   :  { %13 = vsyncpa [#allocation7], 0 }
   0x3   :  { %14 = vsyncpa [#allocation5], 0 }
   0x4   :  { %16 = vsyncpa [#allocation5 + $0x1], 0  ;;  %s1743_s18 = smov 0   ;;  %s1745_s19 = smov 0  }
   0x5   :  { %s1747_s20 = smov 0   ;;  %s1749_s21 = smov 0  }
   0x6   :  { %s1751_s22 = smov 0   ;;  %s1753_s23 = smov 0  }
   0x7 LB: > { %s1265_s24 = sadd.s32 4294967295, %s1688_s23   ;;  %s1266_s25 = sadd.s32 4294967294, %s1688_s23   ;;  %s1688_s23 = sphi %s1753_s23, %s22_s23   ;;  %s1684_s22 = sphi %s1751_s22, %s2105_s22   ;;  %s1680_s21 = sphi %s1749_s21, %s2104_s21   ;;  %s1676_s20 = sphi %s1747_s20, %s2103_s20   ;;  %s1672_s19 = sphi %s1745_s19, %s2102_s19   ;;  %s1668_s18 = sphi %s1743_s18, %s2101_s18  }
   0x8   : > { %p54_p0 = scmp.ne.s32.totalorder %s1672_s19, %s1668_s18  ;;  %p1777_p1 = scmp.eq.s32.totalorder %s1265_s24, 0 }
   0x9   : > { %p1781_p2 = scmp.eq.s32.totalorder %s1265_s24, 1  ;;  %p168_p3 = scmp.eq.s32.totalorder %s1266_s25, 1 }
   0xa   : > { %s2088_s26 = scalar_select %p1777_p1, 1, 0 }
   0xb   : > { %p1787_p4 = por %p1777_p1, %p54_p0  ;;  %p1267_p5 = scmp.ge.s32.totalorder %s1688_s23, 1 }
   0xc   : > { %p1792_p6 = por %p168_p3, %p54_p0  ;;  %p175_p7 = scmp.lt.s32.totalorder %s1688_s23, 3 }
   0xd   : > { %s2090_s28 = scalar_select %p1787_p4, 1, 0 }
   0xe   : > { %s2091_s29 = scalar_select %p1792_p6, 1, 0 }
   0xf   : > { %p1797_p8 = pnand %p1267_p5, %p175_p7  ;;  %s1690_s6 = smov [#allocation6]  }
  0x10   : > { %s187_s7 = sshll.u32 %s1690_s6, 4  ;;  %s1691_s9 = smov [#allocation8]   ;;  %s1801_s7 = int_to_ptr.vmem [resolvable:$true] %s187_s7 }
  0x11   : > { %p1410_p9 = pneg %p1797_p8  ;;  %s203_s10 = sshll.u32 %s1691_s9, 4  ;;  %s1812_s10 = int_to_ptr.vmem [resolvable:$true] %s203_s10 }
  0x12   : > { %s1516_s13 = scalar_lea.hbm %s2079_s1, 512 }
  0x13   : > { %p1808_p11 = pnand %p1410_p9, %p1777_p1  ;;  %p1517_p12 = scmp.ne.s32.totalorder %s2079_s1, %s1516_s13 }
  0x14   : > { %p1523_p5 = scmp.lt.u32.totalorder %s1516_s13, %s2079_s1 }
  0x15   : > { %p1518_p13 = pneg %p1808_p11 }
  0x17   : > { %p1519_p0 = pnand %p1518_p13, %p1517_p12 }
  0x19   : > { %p1520_p3 = pneg %p1519_p0 }
  0x1b   : > { %p1525_p7 = pnand %p1523_p5, %p1520_p3 }
  0x1d   : > { %1528 = shalt.err (!%p1525_p7)
}
  0x1e   : > { %s1529_s24 = scalar_lea.vmem %s1801_s7, 512  ;;  %p1537_p1 = scmp.lt.s32.totalorder %s1801_s7, %s1801_s7 }
  0x1f   : > { %p1530_p9 = scmp.ne.s32.totalorder %s1801_s7, %s1529_s24  ;;  %p1538_p12 = scmp.lt.s32.totalorder %s1529_s24, %s1529_s24 }
  0x21   : > { %p1532_p10 = pnand %p1530_p9, %p1518_p13  ;;  %p1539_p0 = por %p1538_p12, %p1537_p1 }
  0x23   : > { %p1533_p6 = pneg %p1532_p10 }
  0x25   : > { %p1540_p4 = pnand %p1539_p0, %p1533_p6 }
  0x27   : > { %1543 = shalt.err (!%p1540_p4)
}
  0x28   : > { %s1692_s25 = smov 128   ;;  %s1693_s6 = smov 8  }
  0x29   : > { %1413 = dma.hbm_to_vmem [thread:$0]  (!%p1808_p11), %s2079_s1, 512, %s1801_s7, [#allocation7], %s1692_s25, %s1692_s25, %s1693_s6  }
  0x2a   : > { %s1544_s14 = scalar_lea.hbm %s2081_s3, 512 }
  0x2b   : > { %p1545_p1 = scmp.ne.s32.totalorder %s2081_s3, %s1544_s14  ;;  %p1551_p10 = scmp.lt.u32.totalorder %s1544_s14, %s2081_s3 }
  0x2d   : > { %p1547_p4 = pnand %p1545_p1, %p1518_p13 }
  0x2f   : > { %p1548_p6 = pneg %p1547_p4 }
  0x31   : > { %p1553_p3 = pnand %p1551_p10, %p1548_p6 }
  0x33   : > { %1556 = shalt.err (!%p1553_p3)
}
  0x34   : > { %s1557_s7 = scalar_lea.vmem %s1812_s10, 512  ;;  %p1565_p12 = scmp.lt.s32.totalorder %s1812_s10, %s1812_s10 }
  0x35   : > { %p1558_p5 = scmp.ne.s32.totalorder %s1812_s10, %s1557_s7  ;;  %p1566_p0 = scmp.lt.s32.totalorder %s1557_s7, %s1557_s7 }
  0x37   : > { %p1560_p7 = pnand %p1558_p5, %p1518_p13  ;;  %p1567_p1 = por %p1566_p0, %p1565_p12 }
  0x39   : > { %p1561_p9 = pneg %p1560_p7 }
  0x3b   : > { %p1568_p4 = pnand %p1567_p1, %p1561_p9 }
  0x3d   : > { %1571 = shalt.err (!%p1568_p4)
}
  0x3e   : > { %1416 = dma.hbm_to_vmem [thread:$0]  (!%p1808_p11), %s2081_s3, 512, %s1812_s10, [#allocation7], %s1692_s25, %s1692_s25, %s1693_s6  }
  0x3f   : > { %s34_s12 = sadd.s32 1, %s1684_s22  ;;  %s41_s13 = sadd.s32 1, %s1676_s20 }
  0x40   : > { %p36_p13 = scmp.ge.s32.totalorder %s34_s12, 2  ;;  %p48_p6 = scmp.ne.s32.totalorder %s1676_s20, %s1672_s19 }
  0x41   : > { %p49_p10 = scmp.eq.s32.totalorder %s1688_s23, 0  ;;  %p1427_p3 = scmp.lt.s32.totalorder %s1688_s23, 2 }
  0x42   : > { %s2107_s12 = smov (%p36_p13, %s34_s12), 0  ;;  %p1876_p7 = por %p1781_p2, %p48_p6 }
  0x43   : > { %p50_p5 = por %p49_p10, %p48_p6  ;;  %s38_s14 = ssub.s32 %s1684_s22, %s2107_s12 }
  0x44   : > { %s2094_s8 = scalar_select %p1876_p7, 1, 0 }
  0x45   : > { %s220_s15 = sand.u32 1, %s1676_s20   ;;  %p39_p9 = scmp.eq.s32.totalorder %s38_s14, 0 }
  0x46   : > { %s1271_s10 = sshll.u32 %s220_s15, 3  ;;  %s1272_s25 = sshll.u32 %s1684_s22, 7 }
  0x47   : > { %s1885_s6 = scalar_select %p39_p9, %s1676_s20, %s41_s13  }
  0x48   : > { %s1890_s24 = scalar_lea.hbm %s2078_s0, %s1272_s25  ;;  %s224_s27 = scalar_lea.vmem [#allocation3], %s1271_s10 }
  0x49   : > { %s231_s7 = sshll.u32 %s224_s27, 4  ;;  %p1894_p2 = pnand %p1427_p3, %p50_p5  ;;  %s1898_s7 = int_to_ptr.vmem [resolvable:$true] %s231_s7 }
  0x4a   : > { %s221_s11 = scalar_lea.sflag [#allocation4], %s220_s15  ;;  %s1572_s13 = scalar_lea.hbm %s1890_s24, 128 }
  0x4b   : > { %p1573_p11 = scmp.ne.s32.totalorder %s1890_s24, %s1572_s13  ;;  %p1574_p12 = pneg %p1894_p2 }
  0x4c   : > { %s1577_s25 = scalar_lea.hbm %s2078_s0, 256  ;;  %p1578_p4 = scmp.lt.u32.totalorder %s1890_s24, %s2078_s0 }
  0x4d   : > { %p1575_p0 = pnand %p1574_p12, %p1573_p11  ;;  %p1579_p13 = scmp.lt.u32.totalorder %s1577_s25, %s1572_s13 }
  0x4e   : > { %p1581_p10 = scmp.lt.u32.totalorder %s1572_s13, %s1890_s24 }
  0x4f   : > { %p1576_p1 = pneg %p1575_p0  ;;  %p1580_p6 = por %p1579_p13, %p1578_p4 }
  0x51   : > { %p1582_p3 = por %p1581_p10, %p1580_p6 }
  0x53   : > { %p1583_p5 = pnand %p1582_p3, %p1576_p1 }
  0x55   : > { %1586 = shalt.err (!%p1583_p5)
}
  0x56   : > { %s1587_s15 = scalar_lea.vmem %s1898_s7, 128  ;;  %s1694_s27 = smov [#allocation3]  }
  0x57   : > { %p1588_p9 = scmp.ne.s32.totalorder %s1898_s7, %s1587_s15  ;;  %s1592_s14 = sshll.u32 %s1694_s27, 4  ;;  %s1593_s14 = int_to_ptr.vmem [resolvable:$false] %s1592_s14 }
  0x58   : > { %s1594_s10 = scalar_lea.vmem %s1593_s14, 256  ;;  %p1595_p7 = scmp.lt.s32.totalorder %s1898_s7, %s1593_s14 }
  0x59   : > { %p1590_p11 = pnand %p1588_p9, %p1574_p12  ;;  %p1596_p4 = scmp.lt.s32.totalorder %s1594_s10, %s1587_s15 }
  0x5b   : > { %p1591_p0 = pneg %p1590_p11  ;;  %p1597_p13 = por %p1596_p4, %p1595_p7 }
  0x5d   : > { %p1598_p6 = pnand %p1597_p13, %p1591_p0 }
  0x5f   : > { %1601 = shalt.err (!%p1598_p6)
}
  0x60   : > { %1420 = dma.hbm_to_vmem [thread:$0]  (!%p1894_p2), %s1890_s24, 128, %s1898_s7, %s221_s11  }
  0x61   : > { %240 = sbr.rel (%p1797_p8) target bundleno = 1769 (0x6e9), region = 40  ;;  %s1928_s13 = sand.u32 (!%p1797_p8), 1, %s1672_s19  }
  0x62   : > { %s1274_s25 = sshll.u32 (!%p1797_p8), %s1928_s13, 3  ;;  %s243_s16 = scalar_lea.sflag (!%p1797_p8), [#allocation4], %s1928_s13 }
  0x63   : > { %s246_s17 = scalar_lea.vmem (!%p1797_p8), [#allocation3], %s1274_s25  ;;  %p2096_p7 = scmp.ne.s32.totalorder (!%p1797_p8), %s2090_s28, 0 }
  0x68   : > { %1655 = dma.done.wait (%p2096_p7), %s243_s16, 128  }
  0x69   : > { %1657 = vsyncadd (%p2096_p7), %s243_s16, 4294967168  ;;  %p2097_p2 = scmp.ne.s32.totalorder %s2088_s26, 0 }
  0x6b   : > { %1659 = dma.done.wait (%p2097_p2), [#allocation7], 1024  }
  0x6c   : > { %1661 = vsyncadd (%p2097_p2), [#allocation7], 4294966272  ;;  %v1695_v0 = vmov 0.0|0.0   ;;  %vm1696_vm0 = vmmov 0   ;;  %v1697_v1 = vmov 0.0   ;;  %v284_v2 = vld [vmem:[#allocation6] sm:$0xff] }
  0x6d   : > { %1386 = vmatprep.subr.bf16.mxu0 %v1695_v0  ;;  %1332 = vmatprep.mubr.msk.f32.mxu0 %vm1696_vm0, %v1697_v1  ;;  %v285_v3 = vld [vmem:[#allocation6 + $0x8] sm:$0xff]  ;;  %v286_v4 = vld [vmem:[#allocation6 + $0x10] sm:$0xff]  ;;  %v287_v6 = vld [vmem:[#allocation6 + $0x18] sm:$0xff]  ;;  %vm296_vm1 = vcmask 261120   ;;  %s1698_s7 = smov 64   ;;  %s1699_s9 = smov 96  }
  0x6e   : > { %1335 = vmatprep.subr.mxu1 %v1697_v1  ;;  %1337 = vmatprep.mubr.msk.f32.mxu1 %vm1696_vm0, %v1697_v1  ;;  %v1387_v5 = vpack.c.bf16 %v285_v3, %v284_v2  ;;  %v1292_v7 = vld [vmem:[%s2082_s4] ss:$0 sm:$0xff]  ;;  %v1390_v8 = vpack.c.bf16 %v287_v6, %v286_v4  ;;  %v281_v9 = vld [vmem:[%s246_s17] sm:$0xff]  ;;  %s1700_s11 = smov 88   ;;  %s1701_s15 = smov 120   ;;  %vm373_vm2 = vcmask 64512  }
  0x6f   : > { %1062 = vst.msk [vmem:[#allocation2] sm:$0xff] %vm296_vm1, %v1292_v7  ;;  %v1278_v10 = vld [vmem:[%s2080_s2] ss:$0 sm:$0xff]  ;;  %s1702_s27 = smov 80   ;;  %s1703_s14 = smov 112   ;;  %v1065_v60 = vld [vmem:[#allocation8] sm:$0xff] }
  0x70   : > { %1388 = vmatpush3.bf16.msra.mxu0 %v1387_v5  ;;  %s1704_s10 = smov 72   ;;  %s1705_s16 = smov 104   ;;  %v1066_v61 = vld [vmem:[#allocation8 + $0x8] sm:$0xff]  ;;  %v1067_v2 = vld [vmem:[#allocation8 + $0x10] sm:$0xff]  ;;  %v1068_v3 = vld [vmem:[#allocation8 + $0x18] sm:$0xff]  ;;  %vm1047_vm3 = vcmask 130048  }
  0x71   : > { %1389 = vmatprep.subr.bf16.mxu0 %v1695_v0  ;;  %s1706_s17 = smov 56   ;;  %s1707_s26 = smov 40   ;;  %v1393_v63 = vpack.c.bf16 %v1066_v61, %v1065_v60  ;;  %v1396_v5 = vpack.c.bf16 %v1068_v3, %v1067_v2  ;;  %vm1049_vm4 = vcmask 195584  }
  0x72   : > { %s1708_s28 = smov 48   ;;  %s1709_s30 = smov 8  }
  0x73   : > { %s1710_s24 = smov 16   ;;  %p2098_p12 = scmp.ne.s32.totalorder %s2094_s8, 0 }
  0x74   : > { %1391 = vmatpush3.bf16.msra.mxu0 %v1390_v8 }
  0x75   : > { %1355 = vmatprep.subr.mxu0 %v1697_v1 }
  0x77   : > { %1333 = vmatmul.mubr.msk.f32.vlgmr.msra.gmra.mrb[0].mxu0 %vm296_vm1, %v281_v9 }
  0x78   : > { %1357 = vmatprep.mubr.msk.f32.mxu0 %vm1696_vm0, %v1697_v1 }
 0x14a   : > { %v366_v11 = vpop.f32.mrb[0].mxu0 }
 0x14b   : > { %v1960_v12 = vadd.f32 %v1278_v10, %v366_v11  ;;  %v1334_v13 = vpop.f32.mrb[1].mxu0 }
 0x14d   : > { %457 = vrot.lane.b32.xlu1 %v1960_v12, %s1698_s7  ;;  %371 = vrot.lane.b32.xlu0 %v1960_v12, %s1699_s9  ;;  %s1711_s7 = smov 24   ;;  %s1295_s9 = sshll.u32 %s1680_s21, 7 }
 0x14e   : > { %s1712_s21 = smov [#allocation9]  }
 0x151   : > { %538 = vrot.lane.b32.xlu1 %v1960_v12, %s1700_s11  ;;  %s280_s11 = scalar_lea.vmem [#allocation9], %s1274_s25  ;;  %s1606_s25 = sshll.u32 %s1712_s21, 4  ;;  %s1607_s25 = int_to_ptr.vmem [resolvable:$false] %s1606_s25 }
 0x155   : > { %536 = vrot.lane.b32.xlu1 %v1960_v12, %s1701_s15  ;;  %s1163_s15 = sshll.u32 %s280_s11, 4  ;;  %s2030_s15 = int_to_ptr.vmem [resolvable:$true] %s1163_s15 }
 0x156   : > { %p1609_p3 = scmp.lt.s32.totalorder %s2030_s15, %s1607_s25 }
 0x159   : > { %704 = vrot.lane.b32.xlu1 %v1960_v12, %s1702_s27 }
 0x15d   : > { %702 = vrot.lane.b32.xlu1 %v1960_v12, %s1703_s14 }
 0x161   : > { %870 = vrot.lane.b32.xlu1 %v1960_v12, %s1704_s10  ;;  %s2028_s10 = scalar_lea.hbm %s2083_s5, %s1295_s9 }
 0x165   : > { %868 = vrot.lane.b32.xlu1 %v1960_v12, %s1705_s16  ;;  %s1150_s16 = scalar_lea.sflag [#allocation5], %s1928_s13 }
 0x1bf   : > { %v458_v14 = vpop.permute.xlu1 %457  ;;  %v372_v15 = vpop.permute.xlu0 %371 }
 0x1c0   : > { %1336 = vmatpush3.xpose.msk.msra.mxu1 %vm373_vm2, %v372_v15 }
 0x1c1   : > { %1340 = vmatprep.subr.mxu1 %v1697_v1 }
 0x1c3   : > { %v539_v16 = vpop.permute.xlu1 %538  ;;  %1338 = vmatmul.mubr.msk.f32.vlgmr.msra.gmra.mrb[0].mxu1 %vm373_vm2, %v1960_v12 }
 0x1c4   : > { %1341 = vmatpush3.msra.mxu1 %v458_v14  ;;  %1342 = vmatprep.mubr.msk.f32.mxu1 %vm1696_vm0, %v1697_v1 }
 0x1c5   : > { %1345 = vmatprep.subr.mxu1 %v1697_v1 }
 0x1c7   : > { %v537_v17 = vpop.permute.xlu1 %536 }
 0x1cb   : > { %v705_v18 = vpop.permute.xlu1 %704 }
 0x1cc   : > { %1356 = vmatpush3.xpose.msk.msra.mxu0 %vm373_vm2, %v705_v18 }
 0x1cd   : > { %1365 = vmatprep.subr.mxu0 %v1697_v1 }
 0x1cf   : > { %v703_v19 = vpop.permute.xlu1 %702 }
 0x1d0   : > { %1358 = vmatmul.mubr.msk.f32.vlgmr.msra.gmra.mrb[2].mxu0 %vm373_vm2, %v703_v19 }
 0x1d1   : > { %1367 = vmatprep.mubr.msk.f32.mxu0 %vm1696_vm0, %v1697_v1 }
 0x1d3   : > { %v871_v20 = vpop.permute.xlu1 %870 }
 0x1d4   : > { %1366 = vmatpush3.xpose.msk.msra.mxu0 %vm373_vm2, %v871_v20 }
 0x1d5   : > { %1392 = vmatprep.subr.bf16.mxu0 %v1695_v0 }
 0x1d7   : > { %v869_v21 = vpop.permute.xlu1 %868 }
 0x1d8   : > { %1368 = vmatmul.mubr.msk.f32.vlgmr.msra.gmra.mrb[4].mxu0 %vm373_vm2, %v869_v21 }
 0x1d9   : > { %1383 = vmatprep.mubr.msk.f32.mxu0 %vm1696_vm0, %v1697_v1  ;;  %1394 = vmatpush3.bf16.msra.mxu0 %v1393_v63 }
 0x1da   : > { %1395 = vmatprep.subr.bf16.mxu0 %v1695_v0 }
 0x1dd   : > { %1397 = vmatpush3.bf16.msra.mxu0 %v1396_v5 }
 0x296   : > { %v444_v22 = vpop.f32.mrb[0].mxu1 }
 0x297   : > { %v1339_v23 = vpop.f32.mrb[1].mxu1  ;;  %v448_v24 = vsel %vm373_vm2, %v444_v22, -inf }
 0x298   : > { %449 = vmax.xlane.f32.xlu0 %v448_v24 }
 0x2a3   : > { %v776_v25 = vpop.f32.mrb[2].mxu0 }
 0x2a4   : > { %v1359_v26 = vpop.f32.mrb[3].mxu0  ;;  %v780_v29 = vsel %vm373_vm2, %v776_v25, -inf }
 0x2ab   : > { %v942_v27 = vpop.f32.mrb[4].mxu0 }
 0x2ac   : > { %v1369_v28 = vpop.f32.mrb[5].mxu0  ;;  %v946_v30 = vsel %vm373_vm2, %v942_v27, -inf }
 0x2ae   : > { %623 = vrot.lane.b32.xlu0 %v1960_v12, %s1706_s17  ;;  %s1602_s17 = scalar_lea.vmem %s2030_s15, 128 }
 0x2af   : > { %p1603_p8 = scmp.ne.s32.totalorder %s2030_s15, %s1602_s17 }
 0x2b1   : > { %p1604_p1 = pnand %p1603_p8, %p2098_p12 }
 0x2b3   : > { %p1605_p10 = pneg %p1604_p1 }
 0x2cd   : > { %781 = vmax.xlane.f32.xlu0 %v780_v29 }
 0x2d1   : > { %947 = vmax.xlane.f32.xlu0 %v946_v30 }
 0x2e7   : > { %955 = vrot.lane.b32.xlu0 %v1960_v12, %s1707_s26  ;;  %s1608_s26 = scalar_lea.vmem %s1607_s25, 256 }
 0x2e8   : > { %p1610_p5 = scmp.lt.s32.totalorder %s1608_s26, %s1602_s17 }
 0x2ea   : > { %p1611_p9 = por %p1610_p5, %p1609_p3 }
 0x2ec   : > { %p1612_p11 = pnand %p1611_p9, %p1605_p10 }
 0x325   : > { %v450_v31 = vpop.xlane.xlu0 %449 }
 0x326   : > { %v451_v32 = vsub.f32 %v444_v22, %v450_v31 }
 0x328   : > { %v452_v33 = vmul.f32 1.442695, %v451_v32 }
 0x329   : > { %v624_v35 = vpop.permute.xlu0 %623 }
 0x32a   : > { %1500 = vpow2.f32 %v452_v33 }
 0x334   : > { %v1501_v34 = vpop.eup %1500 }
 0x335   : > { %1343 = vmatmul.mubr.msk.f32.vlgmr.msra.gmra.mrb[2].mxu1 %vm373_vm2, %v1501_v34  ;;  %v454_v58 = vsel %vm373_vm2, %v1501_v34, 0.0 }
 0x336   : > { %1346 = vmatpush3.xpose.msk.msra.mxu1 %vm373_vm2, %v539_v16  ;;  %1347 = vmatprep.mubr.msk.f32.mxu1 %vm1696_vm0, %v1697_v1 }
 0x337   : > { %1350 = vmatprep.subr.mxu1 %v1697_v1 }
 0x339   : > { %1348 = vmatmul.mubr.msk.f32.vlgmr.msra.gmra.mrb[4].mxu1 %vm373_vm2, %v537_v17 }
 0x33a   : > { %1351 = vmatpush3.msra.mxu1 %v624_v35  ;;  %1352 = vmatprep.mubr.msk.f32.mxu1 %vm1696_vm0, %v1697_v1 }
 0x33b   : > { %1360 = vmatprep.subr.mxu1 %v1697_v1 }
 0x35a   : > { %v782_v41 = vpop.xlane.xlu0 %781 }
 0x35b   : > { %v783_v42 = vsub.f32 %v776_v25, %v782_v41  ;;  %v1063_v25 = vld [vmem:[#allocation2] sm:$0xff] }
 0x35d   : > { %v784_v43 = vmul.f32 1.442695, %v783_v42 }
 0x35e   : > { %v948_v46 = vpop.xlane.xlu0 %947 }
 0x35f   : > { %1502 = vpow2.f32 %v784_v43  ;;  %v949_v47 = vsub.f32 %v942_v27, %v948_v46 }
 0x361   : > { %v950_v50 = vmul.f32 1.442695, %v949_v47 }
 0x362   : > { %v956_v56 = vpop.permute.xlu0 %955 }
 0x369   : > { %v1503_v44 = vpop.eup %1502 }
 0x36a   : > { %v786_v45 = vsel %vm373_vm2, %v1503_v44, 0.0 }
 0x408   : > { %v2001_v36 = vpop.f32.mrb[2].mxu1 }
 0x409   : > { %v1344_v37 = vpop.f32.mrb[3].mxu1 }
 0x40c   : > { %v610_v38 = vpop.f32.mrb[4].mxu1 }
 0x40d   : > { %v1349_v39 = vpop.f32.mrb[5].mxu1  ;;  %v614_v40 = vsel %vm373_vm2, %v610_v38, -inf }
 0x40e   : > { %615 = vmax.xlane.f32.xlu1 %v614_v40 }
 0x41f   : > { %789 = vrot.lane.b32.xlu1 %v1960_v12, %s1708_s28 }
 0x443   : > { %787 = vadd.xlane.f32.xlu1 %v786_v45 }
 0x49b   : > { %v616_v48 = vpop.xlane.xlu1 %615 }
 0x49c   : > { %v617_v49 = vsub.f32 %v610_v38, %v616_v48 }
 0x49e   : > { %v618_v51 = vmul.f32 1.442695, %v617_v49 }
 0x49f   : > { %v790_v53 = vpop.permute.xlu1 %789 }
 0x4a0   : > { %1504 = vpow2.f32 %v618_v51 }
 0x4a1   : > { %1506 = vpow2.f32 %v950_v50 }
 0x4aa   : > { %v1505_v52 = vpop.eup %1504 }
 0x4ab   : > { %1353 = vmatmul.mubr.msk.f32.vlgmr.msra.gmra.mrb[6].mxu1 %vm373_vm2, %v1505_v52  ;;  %v620_v54 = vsel %vm373_vm2, %v1505_v52, 0.0  ;;  %v1507_v55 = vpop.eup %1506 }
 0x4ac   : > { %1361 = vmatpush3.msra.mxu1 %v790_v53  ;;  %621 = vadd.xlane.f32.xlu0 %v620_v54  ;;  %v952_v57 = vsel %vm373_vm2, %v1507_v55, 0.0 }
 0x4ad   : > { %1362 = vmatprep.mubr.msk.f32.mxu1 %vm1696_vm0, %v1697_v1  ;;  %1370 = vmatprep.subr.mxu1 %v1697_v1 }
 0x4af   : > { %1363 = vmatmul.mubr.msk.f32.vlgmr.msra.gmra.mrb[8].mxu1 %vm373_vm2, %v1503_v44 }
 0x4b0   : > { %1371 = vmatpush3.msra.mxu1 %v956_v56  ;;  %953 = vadd.xlane.f32.xlu0 %v952_v57 }
 0x4b1   : > { %1372 = vmatprep.mubr.msk.f32.mxu1 %vm1696_vm0, %v1697_v1 }
 0x4b3   : > { %1373 = vmatmul.mubr.msk.f32.vlgmr.msra.gmra.mrb[10].mxu1 %vm373_vm2, %v1507_v55 }
 0x4b4   : > { %455 = vadd.xlane.f32.xlu0 %v454_v58 }
 0x4d0   : > { %v788_v62 = vpop.xlane.xlu1 %787 }
 0x539   : > { %v622_v59 = vpop.xlane.xlu0 %621 }
 0x53a   : > { %1508 = vrcp.f32 %v622_v59 }
 0x53b   : > { %1510 = vrcp.f32 %v788_v62 }
 0x53d   : > { %v954_v4 = vpop.xlane.xlu0 %953 }
 0x53e   : > { %1512 = vrcp.f32 %v954_v4 }
 0x541   : > { %v456_v16 = vpop.xlane.xlu0 %455 }
 0x542   : > { %1514 = vrcp.f32 %v456_v16 }
 0x544   : > { %v1509_v1 = vpop.eup %1508 }
 0x545   : > { %v1511_v9 = vpop.eup %1510 }
 0x548   : > { %v1513_v13 = vpop.eup %1512 }
 0x54c   : > { %v1515_v17 = vpop.eup %1514 }
 0x54d   : > { %v535_v19 = vmul.f32 %v1515_v17, %v2001_v36 }
 0x57e   : > { %v695_v6 = vpop.f32.mrb[6].mxu1 }
 0x57f   : > { %v701_v7 = vmul.f32 %v1509_v1, %v695_v6  ;;  %v1354_v8 = vpop.f32.mrb[7].mxu1 }
 0x581   : > { %1035 = vrot.lane.b32.xlu0 %v701_v7, %s1709_s30 }
 0x582   : > { %v861_v10 = vpop.f32.mrb[8].mxu1 }
 0x583   : > { %v867_v11 = vmul.f32 %v1511_v9, %v861_v10  ;;  %v1364_v12 = vpop.f32.mrb[9].mxu1 }
 0x585   : > { %1039 = vrot.lane.b32.xlu1 %v867_v11, %s1710_s24 }
 0x586   : > { %v1027_v0 = vpop.f32.mrb[10].mxu1 }
 0x587   : > { %v1033_v14 = vmul.f32 %v1513_v13, %v1027_v0  ;;  %v1374_v15 = vpop.f32.mrb[11].mxu1 }
 0x589   : > { %1043 = vrot.lane.b32.xlu0 %v1033_v14, %s1711_s7 }
 0x5f3   : > { %v1036_v18 = vpop.permute.xlu0 %1035 }
 0x5f4   : > { %v1046_v21 = vsel %vm373_vm2, %v535_v19, %v1036_v18 }
 0x5f7   : > { %v1040_v20 = vpop.permute.xlu1 %1039 }
 0x5f8   : > { %v1048_v22 = vsel %vm1047_vm3, %v1046_v21, %v1040_v20 }
 0x5fb   : > { %v1044_v23 = vpop.permute.xlu0 %1043 }
 0x5fc   : > { %v1050_v24 = vsel %vm1049_vm4, %v1048_v22, %v1044_v23 }
 0x5fd   : > { %1384 = vmatmul.mubr.msk.f32.vlgmr.msra.gmra.mrb[6].mxu0 %vm296_vm1, %v1050_v24 }
 0x6d0   : > { %v1138_v26 = vpop.f32.mrb[6].mxu0 }
 0x6d1   : > { %v1142_v27 = vadd.f32 %v1138_v26, %v1063_v25  ;;  %v1385_v28 = vpop.f32.mrb[7].mxu0 }
 0x6d3   : > { %1143 = vst.msk [vmem:[#allocation2] sm:$0xff] %vm296_vm1, %v1142_v27 }
 0x6da   : > { %v1147_v29 = vld [vmem:[#allocation2] sm:$0xff] }
 0x6db   : > { %1148 = vst.msk [vmem:[%s280_s11] sm:$0xff] %vm296_vm1, %v1147_v29 }
 0x6dc   : > { %1615 = shalt.err (!%p1612_p11)
}
 0x6dd   : > { %s1616_s13 = scalar_lea.hbm %s2028_s10, 128  ;;  %s1620_s24 = scalar_lea.hbm %s2083_s5, 256 }
 0x6de   : > { %p1617_p0 = scmp.ne.s32.totalorder %s2028_s10, %s1616_s13  ;;  %p1621_p6 = scmp.lt.u32.totalorder %s2028_s10, %s2083_s5 }
 0x6df   : > { %p1622_p7 = scmp.lt.u32.totalorder %s1620_s24, %s1616_s13  ;;  %p1624_p8 = scmp.lt.u32.totalorder %s1616_s13, %s2028_s10 }
 0x6e0   : > { %p1618_p4 = pnand %p1617_p0, %p2098_p12 }
 0x6e1   : > { %p1623_p2 = por %p1622_p7, %p1621_p6 }
 0x6e2   : > { %p1619_p13 = pneg %p1618_p4 }
 0x6e3   : > { %p1625_p1 = por %p1624_p8, %p1623_p2 }
 0x6e5   : > { %p1626_p10 = pnand %p1625_p1, %p1619_p13 }
 0x6e7   : > { %1629 = shalt.err (!%p1626_p10)
}
 0x6e8   : > { %1408 = dma.vmem_to_hbm [thread:$0]  (%p2098_p12), %s2030_s15, 128, %s2028_s10, %s1150_s16  }
 0x6e9 PF: > { %s1175_s11 = sand.u32 1, %s1668_s18   ;;  %p2099_p3 = scmp.ne.s32.totalorder %s2091_s29, 0 }
 0x6ea   : > { %p2100_p5 = scmp.ge.s32.totalorder %s1688_s23, 2  ;;  %s1176_s27 = scalar_lea.sflag [#allocation5], %s1175_s11 }
 0x6ec   : > { %p1422_p9 = pnand %p2100_p5, %p2099_p3 }
 0x6ee   : > { %1663 = dma.done.wait (!%p1422_p9), %s1176_s27, 128  }
 0x6ef   : > { %1665 = vsyncadd (!%p1422_p9), %s1176_s27, 4294967168  ;;  %s22_s23 = sadd.s32 1, %s1688_s23   ;;  %s2101_s18 = smov %s1672_s19 }
 0x6f0   : > { %p19_p11 = scmp.ge.s32.totalorder %s22_s23, 4   ;;  %s2102_s19 = smov %s1676_s20 }
 0x6f1   : > { %s2103_s20 = smov %s1885_s6  ;;  %s2104_s21 = smov %s1684_s22 }
 0x6f2   : > { %s2105_s22 = smov %s2107_s12  ;;  %21 = sbr.rel (!%p19_p11) target bundleno = 7 (0x7), region = 104 }
 0x6f9   :  { %1181 = vsyncpa [#allocation4], 1 }
 0x6fa   :  { %1183 = vsyncpa [#allocation4 + $0x1], 1 }
 0x6fb   :  { %1184 = vsyncpa [#allocation7], 1 }
 0x6fc   :  { %1185 = vsyncpa [#allocation5], 1 }
 0x6fd   :  { %1187 = vsyncpa [#allocation5 + $0x1], 1 }

</bundles_post_ra>
